<compile_context>
chip_gen: v5e
topology: v5e:2x2
jax: 0.10.0
libtpu: 0.0.40
codegen_flags: <defaults>
</compile_context>

<pallas_src>
import jax
import jax.numpy as jnp
from jax.experimental import pallas as pl
from jax.experimental.pallas import tpu as pltpu

PACK = 8     # batch elements packed per row (sublane granularity)
IN_F = 15    # input features


def _round_up(x, m):
    return (x + m - 1) // m * m


def _pick_block_rows(rows, max_block_rows):
    """rows = number of packed rows (PACK batch elements each)."""
    if rows > max_block_rows:
        return max_block_rows                       # many tiles of 32K batch elems
    if rows >= 16:
        # Enough work to split: keep >= 2 grid steps so the "parallel" axis can
        # be sharded across both TensorCores on v7x.
        return _round_up(pl.cdiv(rows, 2), PACK)
    return rows                                     # single full-extent block


def ann4_kernel(x_ref, w1_ref, b1_ref, w2_ref, b2_ref, w3_ref, b3_ref, o_ref):
    # x_ref: (block_rows, 120).  Each row holds 8 independent batch elements, so
    # all compute is row-local (safe for the OOB-padded last tile).
    x = x_ref[...]

    # Layer 1: (R,120) @ (120,24) + (1,24) -> ReLU   (== 8x [x @ W1.T + b1])
    h1 = jnp.dot(x, w1_ref[...], preferred_element_type=jnp.float32) + b1_ref[...]
    h1 = jnp.maximum(h1, 0.0)

    # Layer 2: (R,24) @ (24,32) + (1,32) -> ReLU
    h2 = jnp.dot(h1, w2_ref[...], preferred_element_type=jnp.float32) + b2_ref[...]
    h2 = jnp.maximum(h2, 0.0)

    # Layer 3: (R,32) @ (32,8) + (1,8) -> Sigmoid (exp/recip route to EUP)
    h3 = jnp.dot(h2, w3_ref[...], preferred_element_type=jnp.float32) + b3_ref[...]
    o_ref[...] = jax.nn.sigmoid(h3).astype(o_ref.dtype)


def ann4_forward(x, params, *, max_block_rows=4096):
    """x: (B, 15) float32 (PyTorch convention).  Returns (B, 1) float32.

    params: w1 (3,15), b1 (3,), w2 (4,3), b2 (4,), w3 (1,4), b3 (1,).
    """
    B, f = x.shape
    assert f == IN_F

    # Pack 8 batch elements per row.  When B is already a multiple of 8 (and
    # >= 64) the reshape below is a free layout-preserving view; otherwise we
    # pad a handful of rows (tiny copy).
    Bp = max(_round_up(B, PACK), 64)
    if Bp != B:
        x = jnp.pad(x, ((0, Bp - B), (0, 0)))
    rows = Bp // PACK
    xp = x.reshape(rows, PACK * IN_F)                       # (rows, 120), free view

    # Block-diagonal expanded parameters: kron(I_8, W.T) applied to a packed row
    # is exactly 8 independent copies of y = x @ W.T + b.
    eye = jnp.eye(PACK, dtype=x.dtype)
    w1e = jnp.kron(eye, params["w1"].T)                     # (120, 24)
    w2e = jnp.kron(eye, params["w2"].T)                     # (24, 32)
    w3e = jnp.kron(eye, params["w3"].T)                     # (32, 8)
    b1e = jnp.tile(params["b1"], PACK)[None, :]             # (1, 24)
    b2e = jnp.tile(params["b2"], PACK)[None, :]             # (1, 32)
    b3e = jnp.tile(params["b3"], PACK)[None, :]             # (1, 8)

    block_rows = _pick_block_rows(rows, max_block_rows)
    n_tiles = pl.cdiv(rows, block_rows)

    const = lambda a: pl.BlockSpec(a.shape, lambda i: (0, 0))

    out_p = pl.pallas_call(
        ann4_kernel,
        out_shape=jax.ShapeDtypeStruct((rows, PACK), jnp.float32),
        grid=(n_tiles,),
        in_specs=[
            pl.BlockSpec((block_rows, PACK * IN_F), lambda i: (i, 0)),  # x tile
            const(w1e), const(b1e),
            const(w2e), const(b2e),
            const(w3e), const(b3e),
        ],
        out_specs=pl.BlockSpec((block_rows, PACK), lambda i: (i, 0)),
        compiler_params=pltpu.CompilerParams(
            dimension_semantics=("parallel",),
            vmem_limit_bytes=32 * 1024 * 1024,
        ),
    )(xp, w1e, b1e, w2e, b2e, w3e, b3e)

    # (rows, 8) -> (Bp, 1) is a free reshape; drop the padded batch rows.
    return out_p.reshape(Bp, 1)[:B]


def init_params(key):
    """PyTorch nn.Linear default init: U[-1/sqrt(fan_in), +1/sqrt(fan_in)].

    Weights stored as (out_features, in_features), biases as (out_features,).
    """
    dims = [(15, 3), (3, 4), (4, 1)]
    params = {}
    keys = jax.random.split(key, 2 * len(dims))
    for idx, (fan_in, fan_out) in enumerate(dims):
        bound = 1.0 / (fan_in ** 0.5)
        params[f"w{idx + 1}"] = jax.random.uniform(
            keys[2 * idx], (fan_out, fan_in),
            minval=-bound, maxval=bound, dtype=jnp.float32)
        params[f"b{idx + 1}"] = jax.random.uniform(
            keys[2 * idx + 1], (fan_out,),
            minval=-bound, maxval=bound, dtype=jnp.float32)
    return params


def ann4_reference(x, params):
    h = jnp.maximum(x @ params["w1"].T + params["b1"], 0.0)
    h = jnp.maximum(h @ params["w2"].T + params["b2"], 0.0)
    return jax.nn.sigmoid(h @ params["w3"].T + params["b3"])


if __name__ == "__main__":
    key = jax.random.PRNGKey(0)
    pkey, xkey1, xkey2 = jax.random.split(key, 3)
    params = init_params(pkey)

    # Small shape implied by the module: batch=8, in_features=15.
    x_small = jax.random.normal(xkey1, (8, 15), dtype=jnp.float32)
    out_small = jax.block_until_ready(ann4_forward(x_small, params))
    assert out_small.shape == (8, 1)
    assert jnp.allclose(out_small, ann4_reference(x_small, params),
                        atol=1e-5, rtol=1e-5)

    # Second check: non-multiple-of-8 batch + 2-tile grid (exercises the
    # OOB-padded last block and the "parallel" multi-tile path).
    x_med = jax.random.normal(xkey2, (999, 15), dtype=jnp.float32)
    out_med = jax.block_until_ready(ann4_forward(x_med, params))
    assert out_med.shape == (999, 1)
    assert jnp.allclose(out_med, ann4_reference(x_med, params),
                        atol=1e-5, rtol=1e-5)

    print("KERNEL_OK")
</pallas_src>

<mosaic_0001>
module attributes {stable_mosaic.version = 11 : i64} {
  func.func @ann4_kernel(%arg0: i32, %arg1: memref<8x120xf32, #tpu.memory_space<vmem>>, %arg2: memref<120x24xf32, #tpu.memory_space<vmem>>, %arg3: memref<1x24xf32, #tpu.memory_space<vmem>>, %arg4: memref<24x32xf32, #tpu.memory_space<vmem>>, %arg5: memref<1x32xf32, #tpu.memory_space<vmem>>, %arg6: memref<32x8xf32, #tpu.memory_space<vmem>>, %arg7: memref<1x8xf32, #tpu.memory_space<vmem>>, %arg8: memref<8x8xf32, #tpu.memory_space<vmem>>) attributes {dimension_semantics = [#tpu.dimension_semantics<parallel>], iteration_bounds = array<i64: 1>, scalar_prefetch = 0 : i64, scratch_operands = 0 : i64, tpu.core_type = #tpu.core_type<tc>, window_params = [{transform_indices = @transform_0, window_bounds = array<i64: 8, 120>}, {pipeline_mode = #tpu.pipeline_mode<synchronous>, transform_indices = @transform_1, window_bounds = array<i64: 120, 24>}, {pipeline_mode = #tpu.pipeline_mode<synchronous>, transform_indices = @transform_2, window_bounds = array<i64: 1, 24>}, {pipeline_mode = #tpu.pipeline_mode<synchronous>, transform_indices = @transform_3, window_bounds = array<i64: 24, 32>}, {pipeline_mode = #tpu.pipeline_mode<synchronous>, transform_indices = @transform_4, window_bounds = array<i64: 1, 32>}, {pipeline_mode = #tpu.pipeline_mode<synchronous>, transform_indices = @transform_5, window_bounds = array<i64: 32, 8>}, {pipeline_mode = #tpu.pipeline_mode<synchronous>, transform_indices = @transform_6, window_bounds = array<i64: 1, 8>}, {transform_indices = @transform_7, window_bounds = array<i64: 8, 8>}]} {
    %c0 = arith.constant 0 : index
    %c0_0 = arith.constant 0 : index
    %0 = vector.load %arg1[%c0, %c0_0] : memref<8x120xf32, #tpu.memory_space<vmem>>, vector<8x120xf32>
    %c0_1 = arith.constant 0 : index
    %c0_2 = arith.constant 0 : index
    %1 = vector.load %arg2[%c0_1, %c0_2] : memref<120x24xf32, #tpu.memory_space<vmem>>, vector<120x24xf32>
    %cst = arith.constant dense<0.000000e+00> : vector<8x24xf32>
    %2 = tpu.matmul %0, %1, %cst {dimension_numbers = #tpu.dot_dimension_numbers<[1], [0], [0], [1], [0, 0, 1, 1], [], []>} : vector<8x120xf32>, vector<120x24xf32>, vector<8x24xf32> -> vector<8x24xf32>
    %c0_3 = arith.constant 0 : index
    %c0_4 = arith.constant 0 : index
    %3 = vector.load %arg3[%c0_3, %c0_4] : memref<1x24xf32, #tpu.memory_space<vmem>>, vector<1x24xf32>
    %4 = vector.broadcast %3 : vector<1x24xf32> to vector<8x24xf32>
    %5 = arith.addf %2, %4 : vector<8x24xf32>
    %cst_5 = arith.constant 0.000000e+00 : f32
    %6 = vector.broadcast %cst_5 : f32 to vector<8x24xf32>
    %7 = arith.maximumf %5, %6 : vector<8x24xf32>
    %c0_6 = arith.constant 0 : index
    %c0_7 = arith.constant 0 : index
    %8 = vector.load %arg4[%c0_6, %c0_7] : memref<24x32xf32, #tpu.memory_space<vmem>>, vector<24x32xf32>
    %cst_8 = arith.constant dense<0.000000e+00> : vector<8x32xf32>
    %9 = tpu.matmul %7, %8, %cst_8 {dimension_numbers = #tpu.dot_dimension_numbers<[1], [0], [0], [1], [0, 0, 1, 1], [], []>} : vector<8x24xf32>, vector<24x32xf32>, vector<8x32xf32> -> vector<8x32xf32>
    %c0_9 = arith.constant 0 : index
    %c0_10 = arith.constant 0 : index
    %10 = vector.load %arg5[%c0_9, %c0_10] : memref<1x32xf32, #tpu.memory_space<vmem>>, vector<1x32xf32>
    %11 = vector.broadcast %10 : vector<1x32xf32> to vector<8x32xf32>
    %12 = arith.addf %9, %11 : vector<8x32xf32>
    %cst_11 = arith.constant 0.000000e+00 : f32
    %13 = vector.broadcast %cst_11 : f32 to vector<8x32xf32>
    %14 = arith.maximumf %12, %13 : vector<8x32xf32>
    %c0_12 = arith.constant 0 : index
    %c0_13 = arith.constant 0 : index
    %15 = vector.load %arg6[%c0_12, %c0_13] : memref<32x8xf32, #tpu.memory_space<vmem>>, vector<32x8xf32>
    %cst_14 = arith.constant dense<0.000000e+00> : vector<8x8xf32>
    %16 = tpu.matmul %14, %15, %cst_14 {dimension_numbers = #tpu.dot_dimension_numbers<[1], [0], [0], [1], [0, 0, 1, 1], [], []>} : vector<8x32xf32>, vector<32x8xf32>, vector<8x8xf32> -> vector<8x8xf32>
    %c0_15 = arith.constant 0 : index
    %c0_16 = arith.constant 0 : index
    %17 = vector.load %arg7[%c0_15, %c0_16] : memref<1x8xf32, #tpu.memory_space<vmem>>, vector<1x8xf32>
    %18 = vector.broadcast %17 : vector<1x8xf32> to vector<8x8xf32>
    %19 = arith.addf %16, %18 : vector<8x8xf32>
    %20 = arith.negf %19 : vector<8x8xf32>
    %21 = math.exp %20 : vector<8x8xf32>
    %cst_17 = arith.constant 1.000000e+00 : f32
    %22 = vector.broadcast %cst_17 : f32 to vector<8x8xf32>
    %23 = arith.addf %22, %21 : vector<8x8xf32>
    %24 = arith.divf %22, %23 : vector<8x8xf32>
    %c0_18 = arith.constant 0 : index
    %c0_19 = arith.constant 0 : index
    %25 = vector.load %arg8[%c0_18, %c0_19] : memref<8x8xf32, #tpu.memory_space<vmem>>, vector<8x8xf32>
    tpu.vector_store %arg8[%c0_18, %c0_19], %24 {strides = array<i32>} : memref<8x8xf32, #tpu.memory_space<vmem>>, vector<8x8xf32>,
    return
  }
  func.func @transform_0(%arg0: i32) -> (i32, i32) {
    %c0_i32 = arith.constant 0 : i32
    %c0_i32_0 = arith.constant 0 : i32
    return %arg0, %c0_i32 : i32, i32
  }
  func.func @transform_1(%arg0: i32) -> (i32, i32) {
    %c0_i32 = arith.constant 0 : i32
    %c0_i32_0 = arith.constant 0 : i32
    %c0_i32_1 = arith.constant 0 : i32
    return %c0_i32, %c0_i32_0 : i32, i32
  }
  func.func @transform_2(%arg0: i32) -> (i32, i32) {
    %c0_i32 = arith.constant 0 : i32
    %c0_i32_0 = arith.constant 0 : i32
    %c0_i32_1 = arith.constant 0 : i32
    return %c0_i32, %c0_i32_0 : i32, i32
  }
  func.func @transform_3(%arg0: i32) -> (i32, i32) {
    %c0_i32 = arith.constant 0 : i32
    %c0_i32_0 = arith.constant 0 : i32
    %c0_i32_1 = arith.constant 0 : i32
    return %c0_i32, %c0_i32_0 : i32, i32
  }
  func.func @transform_4(%arg0: i32) -> (i32, i32) {
    %c0_i32 = arith.constant 0 : i32
    %c0_i32_0 = arith.constant 0 : i32
    %c0_i32_1 = arith.constant 0 : i32
    return %c0_i32, %c0_i32_0 : i32, i32
  }
  func.func @transform_5(%arg0: i32) -> (i32, i32) {
    %c0_i32 = arith.constant 0 : i32
    %c0_i32_0 = arith.constant 0 : i32
    %c0_i32_1 = arith.constant 0 : i32
    return %c0_i32, %c0_i32_0 : i32, i32
  }
  func.func @transform_6(%arg0: i32) -> (i32, i32) {
    %c0_i32 = arith.constant 0 : i32
    %c0_i32_0 = arith.constant 0 : i32
    %c0_i32_1 = arith.constant 0 : i32
    return %c0_i32, %c0_i32_0 : i32, i32
  }
  func.func @transform_7(%arg0: i32) -> (i32, i32) {
    %c0_i32 = arith.constant 0 : i32
    %c0_i32_0 = arith.constant 0 : i32
    return %arg0, %c0_i32 : i32, i32
  }
}

</mosaic_0001>

<bundles_post_ra>
// kernel: tpu_custom_call.1
= control target key start
LH: loop header
LB: loop body
LE: loop exit
PB: predicated region body
PF: predicated region fallthrough
CT: control target
= control target key end

     0   :  { %s333_s0 = inlined_call_operand.vmem [shape: f32[8,120], index: 0, kind: input, shape index: {}]   ;;  %s334_s1 = inlined_call_operand.vmem [shape: f32[120,24], index: 1, kind: input, shape index: {}]   ;;  %s335_s2 = inlined_call_operand.vmem [shape: f32[1,24], index: 2, kind: input, shape index: {}]   ;;  %s336_s3 = inlined_call_operand.vmem [shape: f32[24,32], index: 3, kind: input, shape index: {}]   ;;  %s337_s4 = inlined_call_operand.vmem [shape: f32[1,32], index: 4, kind: input, shape index: {}]   ;;  %s338_s5 = inlined_call_operand.vmem [shape: f32[32,8], index: 5, kind: input, shape index: {}]   ;;  %s339_s6 = inlined_call_operand.vmem [shape: f32[1,8], index: 6, kind: input, shape index: {}]   ;;  %s340_s7 = inlined_call_operand.hbm [shape: f32[8,8], index: 7, kind: output, shape index: {}]  }
   0x1   :  { %v42_v0 = vld [vmem:[%s334_s1 + $0x70] sm:$0xff]  ;;  %v41_v1 = vld [vmem:[%s334_s1 + $0x68] sm:$0xff]  ;;  %v40_v2 = vld [vmem:[%s334_s1 + $0x60] sm:$0xff] }
   0x2   :  { %52 = vmatpush.msra.mxu0 %v42_v0  ;;  %v39_v3 = vld [vmem:[%s334_s1 + $0x58] sm:$0xff]  ;;  %v38_v4 = vld [vmem:[%s334_s1 + $0x50] sm:$0xff] }
   0x4   :  { %53 = vmatpush.msra.mxu0 %v41_v1 }
   0x6   :  { %54 = vmatpush.msra.mxu0 %v40_v2 }
   0x7   :  { %12 = vsyncpa [#allocation3], 0  ;;  %v37_v5 = vld [vmem:[%s334_s1 + $0x48] sm:$0xff]  ;;  %v36_v6 = vld [vmem:[%s334_s1 + $0x40] sm:$0xff]  ;;  %vm47_vm0 = vcmask 982016   ;;  %vm79_vm1 = vcmask 195584  }
   0x8   :  { %55 = vmatpush.msra.mxu0 %v39_v3  ;;  %v35_v7 = vld [vmem:[%s334_s1 + $0x38] sm:$0xff]  ;;  %v34_v8 = vld [vmem:[%s334_s1 + $0x30] sm:$0xff]  ;;  %v33_v9 = vld [vmem:[%s334_s1 + $0x28] sm:$0xff]  ;;  %vm112_vm2 = vcmask 261120   ;;  %vm155_vm6 = vcmask 64512  }
   0x9   :  { %v32_v10 = vld [vmem:[%s334_s1 + $0x20] sm:$0xff]  ;;  %v31_v11 = vld [vmem:[%s334_s1 + $0x18] sm:$0xff]  ;;  %v30_v12 = vld [vmem:[%s334_s1 + $0x10] sm:$0xff] }
   0xa   :  { %56 = vmatpush.msra.mxu0 %v38_v4  ;;  %v29_v13 = vld [vmem:[%s334_s1 + $0x8] sm:$0xff]  ;;  %v28_v14 = vld [vmem:[%s334_s1] sm:$0xff]  ;;  %v74_v16 = vld [vmem:[%s336_s3 + $0x10] sm:$0xff] }
   0xb   :  { %v27_v15 = vld [vmem:[%s333_s0] sm:$0xff]  ;;  %96 = vmatpush.msra.mxu1 %v74_v16  ;;  %v73_v17 = vld [vmem:[%s336_s3 + $0x8] sm:$0xff]  ;;  %v107_v19 = vld [vmem:[%s338_s5 + $0x18] sm:$0xff] }
   0xc   :  { %57 = vmatpush.msra.mxu0 %v37_v5  ;;  %v72_v18 = vld [vmem:[%s336_s3] sm:$0xff]  ;;  %128 = vmatpush.msra.mxu2 %v107_v19  ;;  %v106_v24 = vld [vmem:[%s338_s5 + $0x10] sm:$0xff]  ;;  %v105_v25 = vld [vmem:[%s338_s5 + $0x8] sm:$0xff] }
   0xd   :  { %97 = vmatpush.msra.mxu1 %v73_v17  ;;  %v178_v20 = vld [vmem:[%s335_s2] ss:$0 sm:$0xff] }
   0xe   :  { %58 = vmatpush.msra.mxu0 %v36_v6  ;;  %129 = vmatpush.msra.mxu2 %v106_v24  ;;  %v104_v26 = vld [vmem:[%s338_s5] sm:$0xff] }
   0xf   :  { %98 = vmatpush.msra.mxu1 %v72_v18  ;;  %v179_v27 = vld [vmem:[%s337_s4] ss:$0 sm:$0xff]  ;;  %s211_s4 = smov [#allocation2]  }
  0x10   :  { %59 = vmatpush.msra.mxu0 %v35_v7  ;;  %130 = vmatpush.msra.mxu2 %v105_v25  ;;  %v180_v31 = vld [vmem:[%s339_s6] ss:$0 sm:$0xff]  ;;  %s162_s5 = sshll.u32 %s211_s4, 4  ;;  %s164_s6 = sshll.u32 %s340_s7, 4  ;;  %s163_s5 = int_to_ptr.vmem [resolvable:$true] %s162_s5  ;;  %s165_s6 = int_to_ptr.hbm [resolvable:$true] %s164_s6 }
  0x12   :  { %60 = vmatpush.msra.mxu0 %v34_v8  ;;  %131 = vmatpush.msra.mxu2 %v104_v26 }
  0x14   :  { %61 = vmatpush.msra.mxu0 %v33_v9 }
  0x16   :  { %62 = vmatpush.msra.mxu0 %v32_v10 }
  0x18   :  { %63 = vmatpush.msra.mxu0 %v31_v11 }
  0x1a   :  { %64 = vmatpush.msra.mxu0 %v30_v12 }
  0x1c   :  { %65 = vmatpush.msra.mxu0 %v29_v13 }
  0x1e   :  { %66 = vmatpush.msra.mxu0 %v28_v14 }
  0x1f   :  { %173 = vmatmul.msk.f32.vlgmr.msra.gmra.mxu0 %vm47_vm0, %v27_v15 }
  0x9c   :  { %v68_v21 = vpop.f32.mrf.mxu0 }
  0x9d   :  { %v69_v22 = vadd.f32 %v178_v20, %v68_v21 }
  0x9f   :  { %v71_v23 = vmax.f32 %v69_v22, 0.0 }
  0xa1   :  { %174 = vmatmul.msk.f32.vlgmr.msra.gmra.mxu1 %vm79_vm1, %v71_v23 }
 0x11e   :  { %v100_v28 = vpop.f32.mrf.mxu1 }
 0x11f   :  { %v101_v29 = vadd.f32 %v179_v27, %v100_v28 }
 0x121   :  { %v103_v30 = vmax.f32 %v101_v29, 0.0 }
 0x123   :  { %175 = vmatmul.msk.f32.vlgmr.msra.gmra.mxu2 %vm112_vm2, %v103_v30 }
 0x1a6   :  { %v133_v32 = vpop.f32.mrf.mxu2 }
 0x1a7   :  { %v134_v33 = vadd.f32 %v180_v31, %v133_v32 }
 0x1a9   :  { %v176_v34 = vmul.f32 -1.442695, %v134_v33 }
 0x1ab   :  { %181 = vpow2.f32 %v176_v34 }
 0x1b1   :  { %v182_v35 = vpop.eup %181 }
 0x1b2   :  { %v139_v36 = vadd.f32 1.0, %v182_v35 }
 0x1b4   :  { %183 = vrcp.f32 %v139_v36  ;;  %v151_v40 = vand.u32 2147483648, %v139_v36  ;;  %v149_v42 = vand.u32 2147483647, %v139_v36  ;;  %vm145_vm4 = vweird.f32 %v139_v36 }
 0x1b6   :  { %v152_v44 = vor.u32 1.1754944e-38, %v151_v40  ;;  %vm150_vm7 = vcmp.eq.f32.partialorder %v149_v42, 8.507059e+37 }
 0x1ba   :  { %v184_v37 = vpop.eup %183 }
 0x1bb   :  { %v141_v38 = vmul.f32 %v184_v37, %v139_v36  ;;  %vm146_vm3 = vweird.f32 %v184_v37 }
 0x1bc   :  { %vm147_vm5 = vmor %vm145_vm4, %vm146_vm3 }
 0x1bd   :  { %v142_v39 = vsub.f32 1.0, %v141_v38 }
 0x1bf   :  { %v143_v41 = vmul.f32 %v184_v37, %v142_v39 }
 0x1c1   :  { %v144_v43 = vadd.f32 %v184_v37, %v143_v41 }
 0x1c3   :  { %v148_v45 = vsel %vm147_vm5, %v184_v37, %v144_v43 }
 0x1c4   :  { %v153_v46 = vsel %vm150_vm7, %v152_v44, %v148_v45 }
 0x1c5   :  { %156 = vst.msk [vmem:[#allocation2] sm:$0xff] %vm155_vm6, %v153_v46 }
 0x1c6   :  { %167 = dma.vmem_to_hbm [thread:$0]  %s163_s5, 128, %s165_s6, [#allocation3]  }
 0x1c7   :  { %209 = dma.done.wait [#allocation3], 128  }
 0x1c8   :  { %210 = vsyncadd [#allocation3], 4294967168 }
 0x1c9   :  { %172 = vsyncpa [#allocation3], 1 }

</bundles_post_ra>
